<compile_context>
chip_gen: v5e
topology: v5e:2x2
jax: 0.10.0
libtpu: 0.0.40
codegen_flags: <defaults>
</compile_context>

<pallas_src>
import numpy as np
import jax
import jax.numpy as jnp
from jax.experimental import pallas as pl
from jax.experimental.pallas import tpu as pltpu

_ALIGN = 256                               # modest padding for the N x N support
_RESIDENT_XW_BYTES = 8 * 1024 * 1024       # keep xw whole in VMEM below this


def _round_up(x, m):
    return ((x + m - 1) // m) * m


def _pick_tile(dim, target, unit):
    """Largest multiple of `unit` that divides `dim` and is <= target."""
    t = max(unit, min(target, dim))
    t = (t // unit) * unit
    while t > unit and dim % t:
        t -= unit
    return t


def _maybe_buffered_spec(block_shape, index_map, depth):
    """BlockSpec with pipeline_mode=pl.Buffered(depth) when supported."""
    try:
        return pl.BlockSpec(block_shape, index_map,
                            pipeline_mode=pl.Buffered(depth))
    except (TypeError, AttributeError):
        return pl.BlockSpec(block_shape, index_map)


# ---------------------------------------------------------------------------
# Kernel 1: xw = x @ W   (tiny next to the N^2*D aggregation; emitted in the
#                         aggregation's compute dtype so MXU operands match)
# ---------------------------------------------------------------------------
def _xw_kernel(x_ref, w_ref, o_ref):
    o_ref[...] = jnp.dot(
        x_ref[...], w_ref[...], preferred_element_type=jnp.float32
    ).astype(o_ref.dtype)


# ---------------------------------------------------------------------------
# Kernel 2: y = leaky_relu(support @ xw)   (tiled, f32 accumulation)
# ---------------------------------------------------------------------------
def _make_aggregate_kernel(tk, resident_xw, use_scratch, slope=0.01):
    def _body(s_ref, xw_ref, o_ref, acc_ref):
        k = pl.program_id(1)

        @pl.when(k == 0)
        def _():
            acc_ref[...] = jnp.zeros_like(acc_ref)

        if resident_xw:
            # xw is resident in VMEM across the whole grid; slice the k-chunk.
            start = pl.multiple_of(k * tk, tk)
            xw = xw_ref[pl.ds(start, tk), :]
        else:
            xw = xw_ref[...]

        acc_ref[...] += jnp.dot(
            s_ref[...], xw, preferred_element_type=jnp.float32
        )

        @pl.when(k == pl.num_programs(1) - 1)
        def _():
            acc = acc_ref[...]
            # F.leaky_relu with PyTorch default negative_slope = 0.01
            o_ref[...] = jnp.where(acc > 0, acc, slope * acc).astype(o_ref.dtype)

    if use_scratch:
        def kernel(s_ref, xw_ref, o_ref, acc_ref):
            _body(s_ref, xw_ref, o_ref, acc_ref)
    else:
        # f32 output: accumulate directly into the resident output block.
        def kernel(s_ref, xw_ref, o_ref):
            _body(s_ref, xw_ref, o_ref, o_ref)
    return kernel


# ---------------------------------------------------------------------------
# Support preparation (do this ONCE when support is reused across GCN layers)
# ---------------------------------------------------------------------------
def prepare_support(support, *, compute_dtype=jnp.bfloat16, n_padded=None):
    """Cast + zero-pad the (N, N) support to (_ALIGN-aligned, compute_dtype).

    Doing this once outside the per-layer path avoids an extra read+write
    HBM pass over the N^2 operand on every GCN layer.
    """
    N = support.shape[0]
    compute_dtype = jnp.dtype(compute_dtype)
    if n_padded is None:
        n_padded = _round_up(N, _ALIGN)
    s = support if support.dtype == compute_dtype else support.astype(compute_dtype)
    if n_padded != N:
        s = jnp.pad(s, ((0, n_padded - N), (0, n_padded - N)))
    return s


# ---------------------------------------------------------------------------
# Wrapper
# ---------------------------------------------------------------------------
def graph_convolution(x, weight, support, *, compute_dtype=jnp.bfloat16,
                      prepared_support=None):
    """Fused GCN layer: (leaky_relu(support @ (x @ weight)), support).

    compute_dtype: dtype both operands of the dominant support @ xw matmul
      are streamed in (default bf16: half HBM bytes + full-rate MXU);
      accumulation is always f32.  Use jnp.float32 for bit-faithful f32.
    prepared_support: optional output of prepare_support() so the N^2
      pad/cast pass is paid once and reused across layers.
    """
    N, D_in = x.shape
    D_out = weight.shape[1]
    out_dtype = x.dtype
    compute_dtype = jnp.dtype(compute_dtype)

    # Lane-dense output; use a 256-wide N-dim when D_out is naturally > 128
    # (v6e/v7x MXUs are 256 wide); padding is sliced off in the wrapper.
    D_out_p = 128 if D_out <= 128 else _round_up(D_out, 256)

    # Modest alignment padding only; tiles are chosen as divisors of Np so
    # no tile-granularity zero rows/cols are DMA'd or MXU'd.
    Np = _round_up(N, _ALIGN)
    TM = _pick_tile(Np, min(1024, max(128, Np // 2)), 8)   # >= 2 row tiles
    TK = _pick_tile(Np, 2048, 128)                         # reduction tile
    TR = _pick_tile(Np, 512, 8)                            # x@W row tile

    # ---- the N^2 HBM-dominant operand -----------------------------------
    if prepared_support is not None:
        s_p = prepared_support
        if s_p.shape != (Np, Np) or s_p.dtype != compute_dtype:
            raise ValueError(
                f"prepared_support must be {(Np, Np)} {compute_dtype}, "
                f"got {s_p.shape} {s_p.dtype}")
    elif support.shape == (Np, Np) and support.dtype == compute_dtype:
        s_p = support                      # already aligned & cast: zero-copy
    else:
        s_p = prepare_support(support, compute_dtype=compute_dtype, n_padded=Np)

    # ---- kernel 1: xw = x @ W (emitted in compute_dtype) -----------------
    x_p = jnp.pad(x, ((0, Np - N), (0, 0)))
    w_p = jnp.pad(weight, ((0, 0), (0, D_out_p - D_out)))
    xw_p = pl.pallas_call(
        _xw_kernel,
        out_shape=jax.ShapeDtypeStruct((Np, D_out_p), compute_dtype),
        grid_spec=pltpu.PrefetchScalarGridSpec(
            num_scalar_prefetch=0,
            grid=(Np // TR,),
            in_specs=[
                pl.BlockSpec((TR, D_in), lambda i: (i, 0)),
                pl.BlockSpec((D_in, D_out_p), lambda i: (0, 0)),
            ],
            out_specs=pl.BlockSpec((TR, D_out_p), lambda i: (i, 0)),
        ),
        compiler_params=pltpu.CompilerParams(
            dimension_semantics=("parallel",),
        ),
    )(x_p, w_p)

    # ---- kernel 2: y = leaky_relu(support @ xw) --------------------------
    c_item = compute_dtype.itemsize
    o_item = jnp.dtype(out_dtype).itemsize

    # Keep xw fully resident in VMEM when it fits -> no (Np/TM)-fold re-read.
    resident_xw = Np * D_out_p * c_item <= _RESIDENT_XW_BYTES
    # f32 outputs accumulate directly in the resident output block.
    use_scratch = jnp.dtype(out_dtype) != jnp.dtype(jnp.float32)

    if resident_xw:
        xw_spec = pl.BlockSpec((Np, D_out_p), lambda i, k: (0, 0))
    else:
        xw_spec = pl.BlockSpec((TK, D_out_p), lambda i, k: (k, 0))

    # Deeper pipelining on the streamed support operand (helps v7x most).
    support_spec = _maybe_buffered_spec((TM, TK), lambda i, k: (i, k), 3)

    scratch = [pltpu.VMEM((TM, D_out_p), jnp.float32)] if use_scratch else []

    cost = pl.CostEstimate(
        flops=2 * Np * Np * D_out_p,
        transcendentals=0,
        bytes_accessed=int(Np * Np * c_item            # support
                           + Np * D_out_p * c_item     # xw
                           + Np * D_out_p * o_item),   # output
    )

    y_p = pl.pallas_call(
        _make_aggregate_kernel(TK, resident_xw, use_scratch),
        out_shape=jax.ShapeDtypeStruct((Np, D_out_p), out_dtype),
        grid_spec=pltpu.PrefetchScalarGridSpec(
            num_scalar_prefetch=0,
            grid=(Np // TM, Np // TK),        # reduction axis last
            in_specs=[support_spec, xw_spec],
            out_specs=pl.BlockSpec((TM, D_out_p), lambda i, k: (i, 0)),
            scratch_shapes=scratch,
        ),
        compiler_params=pltpu.CompilerParams(
            dimension_semantics=("parallel", "arbitrary"),
            vmem_limit_bytes=48 * 1024 * 1024,
        ),
        cost_estimate=cost,
    )(s_p, xw_p)

    # Slice padding off; module returns (activation(out), support).
    y = y_p[:N, :D_out]
    return y, support


def glorot_init(key, input_dim, output_dim):
    init_range = np.sqrt(6.0 / (input_dim + output_dim))
    return jax.random.uniform(
        key, (input_dim, output_dim), dtype=jnp.float32,
        minval=-init_range, maxval=init_range)


if __name__ == "__main__":
    # Small deterministic example consistent with the module's forward:
    # N nodes with D_in features, projected to D_out.
    N, D_in, D_out = 64, 32, 16
    key = jax.random.PRNGKey(0)
    kx, ks, kw = jax.random.split(key, 3)

    x = jax.random.normal(kx, (N, D_in), dtype=jnp.float32)
    support = jax.random.uniform(ks, (N, N), dtype=jnp.float32) / N   # dense adj
    weight = glorot_init(kw, D_in, D_out)

    # Default (bf16-streamed) path; support prepared ONCE and reused, like a
    # multi-layer GCN would -- no per-layer pad/cast HBM pass.
    s_prep = prepare_support(support, compute_dtype=jnp.bfloat16)
    y, sup_out = graph_convolution(x, weight, support, prepared_support=s_prep)
    y = jax.block_until_ready(y)

    # References.
    xw_ref = x @ weight
    ref_f32 = jax.nn.leaky_relu(support @ xw_ref, negative_slope=0.01)
    ref_bf16 = jax.nn.leaky_relu(
        jnp.dot(support.astype(jnp.bfloat16), xw_ref.astype(jnp.bfloat16),
                preferred_element_type=jnp.float32),
        negative_slope=0.01)

    # bf16-streamed kernel matches a bf16-operand reference closely ...
    np.testing.assert_allclose(np.asarray(y), np.asarray(ref_bf16),
                               rtol=2e-2, atol=5e-3)
    # ... and the f32 reference within bf16 operand-rounding tolerance.
    np.testing.assert_allclose(np.asarray(y), np.asarray(ref_f32),
                               rtol=5e-2, atol=5e-3)

    # Full-precision path (compute_dtype=f32) matches the f32 reference tightly.
    y32, _ = graph_convolution(x, weight, support, compute_dtype=jnp.float32)
    y32 = jax.block_until_ready(y32)
    np.testing.assert_allclose(np.asarray(y32), np.asarray(ref_f32),
                               rtol=1e-5, atol=1e-5)

    assert sup_out.shape == (N, N)
    print("KERNEL_OK")
</pallas_src>

<mosaic_0001>
module attributes {stable_mosaic.version = 11 : i64} {
  func.func @_xw_kernel(%arg0: i32, %arg1: memref<256x32xf32, #tpu.memory_space<vmem>>, %arg2: memref<32x128xf32, #tpu.memory_space<vmem>>, %arg3: memref<256x128xbf16, #tpu.memory_space<vmem>>) attributes {dimension_semantics = [#tpu.dimension_semantics<parallel>], iteration_bounds = array<i64: 1>, scalar_prefetch = 0 : i64, scratch_operands = 0 : i64, tpu.core_type = #tpu.core_type<tc>, window_params = [{transform_indices = @transform_0, window_bounds = array<i64: 256, 32>}, {pipeline_mode = #tpu.pipeline_mode<synchronous>, transform_indices = @transform_1, window_bounds = array<i64: 32, 128>}, {transform_indices = @transform_2, window_bounds = array<i64: 256, 128>}]} {
    %c0 = arith.constant 0 : index
    %c0_0 = arith.constant 0 : index
    %0 = vector.load %arg1[%c0, %c0_0] : memref<256x32xf32, #tpu.memory_space<vmem>>, vector<256x32xf32>
    %c0_1 = arith.constant 0 : index
    %c0_2 = arith.constant 0 : index
    %1 = vector.load %arg2[%c0_1, %c0_2] : memref<32x128xf32, #tpu.memory_space<vmem>>, vector<32x128xf32>
    %cst = arith.constant dense<0.000000e+00> : vector<256x128xf32>
    %2 = tpu.matmul %0, %1, %cst {dimension_numbers = #tpu.dot_dimension_numbers<[1], [0], [0], [1], [0, 0, 1, 1], [], []>} : vector<256x32xf32>, vector<32x128xf32>, vector<256x128xf32> -> vector<256x128xf32>
    %3 = arith.truncf %2 : vector<256x128xf32> to vector<256x128xbf16>
    %c0_3 = arith.constant 0 : index
    %c0_4 = arith.constant 0 : index
    %4 = vector.load %arg3[%c0_3, %c0_4] : memref<256x128xbf16, #tpu.memory_space<vmem>>, vector<256x128xbf16>
    tpu.vector_store %arg3[%c0_3, %c0_4], %3 {strides = array<i32>} : memref<256x128xbf16, #tpu.memory_space<vmem>>, vector<256x128xbf16>,
    return
  }
  func.func @transform_0(%arg0: i32) -> (i32, i32) {
    %c0_i32 = arith.constant 0 : i32
    %c0_i32_0 = arith.constant 0 : i32
    return %arg0, %c0_i32 : i32, i32
  }
  func.func @transform_1(%arg0: i32) -> (i32, i32) {
    %c0_i32 = arith.constant 0 : i32
    %c0_i32_0 = arith.constant 0 : i32
    %c0_i32_1 = arith.constant 0 : i32
    return %c0_i32, %c0_i32_0 : i32, i32
  }
  func.func @transform_2(%arg0: i32) -> (i32, i32) {
    %c0_i32 = arith.constant 0 : i32
    %c0_i32_0 = arith.constant 0 : i32
    return %arg0, %c0_i32 : i32, i32
  }
}

</mosaic_0001>

<bundles_post_ra>
// kernel: tpu_custom_call.1
= control target key start
LH: loop header
LB: loop body
LE: loop exit
PB: predicated region body
PF: predicated region fallthrough
CT: control target
= control target key end

     0   :  { %vm48_vm0 = vcmask 261120   ;;  %s669_s0 = inlined_call_operand.vmem [shape: f32[256,32], index: 0, kind: input, shape index: {}]   ;;  %s670_s1 = inlined_call_operand.vmem [shape: f32[32,128], index: 1, kind: input, shape index: {}]   ;;  %s671_s2 = inlined_call_operand.hbm [shape: bf16[256,128], index: 2, kind: output, shape index: {}]  }
   0x1   :  { %v47_v0 = vld [vmem:[%s670_s1 + $0x18] sm:$0xff]  ;;  %v46_v1 = vld [vmem:[%s670_s1 + $0x10] sm:$0xff]  ;;  %v45_v2 = vld [vmem:[%s670_s1 + $0x8] sm:$0xff] }
   0x2   :  { %157 = vmatpush.msra.mxu0 %v47_v0  ;;  %467 = vmatpush.msra.mxu1 %v47_v0  ;;  %v44_v3 = vld [vmem:[%s670_s1] sm:$0xff] }
   0x3   :  { %468 = vmatpush.msra.mxu2 %v47_v0  ;;  %469 = vmatpush.msra.mxu3 %v47_v0  ;;  %v12_v4 = vld [vmem:[%s669_s0] sm:$0xff] }
   0x4   :  { %158 = vmatpush.msra.mxu0 %v46_v1  ;;  %470 = vmatpush.msra.mxu1 %v46_v1  ;;  %v20_v5 = vld [vmem:[%s669_s0 + $0x40] sm:$0xff] }
   0x5   :  { %471 = vmatpush.msra.mxu2 %v46_v1  ;;  %472 = vmatpush.msra.mxu3 %v46_v1  ;;  %v28_v6 = vld [vmem:[%s669_s0 + $0x80] sm:$0xff] }
   0x6   :  { %159 = vmatpush.msra.mxu0 %v45_v2  ;;  %473 = vmatpush.msra.mxu1 %v45_v2  ;;  %v36_v7 = vld [vmem:[%s669_s0 + $0xc0] sm:$0xff] }
   0x7   :  { %474 = vmatpush.msra.mxu2 %v45_v2  ;;  %475 = vmatpush.msra.mxu3 %v45_v2 }
   0x8   :  { %160 = vmatpush.msra.mxu0 %v44_v3  ;;  %476 = vmatpush.msra.mxu1 %v44_v3 }
   0x9   :  { %7 = vsyncpa [#allocation3], 0  ;;  %477 = vmatpush.msra.mxu2 %v44_v3  ;;  %478 = vmatpush.msra.mxu3 %v44_v3  ;;  %v13_v8 = vld [vmem:[%s669_s0 + $0x8] sm:$0xff]  ;;  %v14_v12 = vld [vmem:[%s669_s0 + $0x10] sm:$0xff]  ;;  %s328_s25 = sshll.u32 %s671_s2, 4  ;;  %s509_s26 = smov 64   ;;  %s329_s25 = int_to_ptr.hbm [resolvable:$true] %s328_s25 }
   0xa   :  { %340 = vmatmul.msk.f32.vlgmr.msra.gmra.mxu0 %vm48_vm0, %v12_v4  ;;  %348 = vmatmul.msk.f32.vlgmr.msra.gmra.mxu1 %vm48_vm0, %v20_v5  ;;  %v21_v9 = vld [vmem:[%s669_s0 + $0x48] sm:$0xff]  ;;  %v22_v13 = vld [vmem:[%s669_s0 + $0x50] sm:$0xff]  ;;  %v15_v16 = vld [vmem:[%s669_s0 + $0x18] sm:$0xff]  ;;  %s510_s27 = smov 4  }
   0xb   :  { %356 = vmatmul.msk.f32.vlgmr.msra.gmra.mxu2 %vm48_vm0, %v28_v6  ;;  %364 = vmatmul.msk.f32.vlgmr.msra.gmra.mxu3 %vm48_vm0, %v36_v7  ;;  %v29_v10 = vld [vmem:[%s669_s0 + $0x88] sm:$0xff]  ;;  %v30_v14 = vld [vmem:[%s669_s0 + $0x90] sm:$0xff]  ;;  %v23_v17 = vld [vmem:[%s669_s0 + $0x58] sm:$0xff] }
   0xc   :  { %v37_v11 = vld [vmem:[%s669_s0 + $0xc8] sm:$0xff]  ;;  %v38_v15 = vld [vmem:[%s669_s0 + $0xd0] sm:$0xff]  ;;  %v31_v18 = vld [vmem:[%s669_s0 + $0x98] sm:$0xff] }
   0xd   :  { %v39_v19 = vld [vmem:[%s669_s0 + $0xd8] sm:$0xff]  ;;  %v16_v20 = vld [vmem:[%s669_s0 + $0x20] sm:$0xff]  ;;  %v17_v24 = vld [vmem:[%s669_s0 + $0x28] sm:$0xff] }
   0xe   :  { %v24_v21 = vld [vmem:[%s669_s0 + $0x60] sm:$0xff]  ;;  %v25_v25 = vld [vmem:[%s669_s0 + $0x68] sm:$0xff]  ;;  %v18_v28 = vld [vmem:[%s669_s0 + $0x30] sm:$0xff] }
   0xf   :  { %v32_v22 = vld [vmem:[%s669_s0 + $0xa0] sm:$0xff]  ;;  %v33_v26 = vld [vmem:[%s669_s0 + $0xa8] sm:$0xff]  ;;  %v26_v29 = vld [vmem:[%s669_s0 + $0x70] sm:$0xff] }
  0x10   :  { %v40_v23 = vld [vmem:[%s669_s0 + $0xe0] sm:$0xff]  ;;  %v41_v27 = vld [vmem:[%s669_s0 + $0xe8] sm:$0xff]  ;;  %v34_v30 = vld [vmem:[%s669_s0 + $0xb0] sm:$0xff] }
  0x11   :  { %v42_v31 = vld [vmem:[%s669_s0 + $0xf0] sm:$0xff]  ;;  %v19_v32 = vld [vmem:[%s669_s0 + $0x38] sm:$0xff] }
  0x12   :  { %341 = vmatmul.msk.f32.gmra.mxu0 %vm48_vm0, %v13_v8  ;;  %349 = vmatmul.msk.f32.gmra.mxu1 %vm48_vm0, %v21_v9  ;;  %v27_v33 = vld [vmem:[%s669_s0 + $0x78] sm:$0xff] }
  0x13   :  { %357 = vmatmul.msk.f32.gmra.mxu2 %vm48_vm0, %v29_v10  ;;  %365 = vmatmul.msk.f32.gmra.mxu3 %vm48_vm0, %v37_v11  ;;  %v35_v34 = vld [vmem:[%s669_s0 + $0xb8] sm:$0xff] }
  0x14   :  { %v43_v35 = vld [vmem:[%s669_s0 + $0xf8] sm:$0xff]  ;;  %s508_s0 = smov [#allocation2]  }
  0x15   :  { %s326_s1 = sshll.u32 %s508_s0, 4  ;;  %s327_s1 = int_to_ptr.vmem [resolvable:$true] %s326_s1 }
  0x1a   :  { %342 = vmatmul.msk.f32.gmra.mxu0 %vm48_vm0, %v14_v12  ;;  %350 = vmatmul.msk.f32.gmra.mxu1 %vm48_vm0, %v22_v13 }
  0x1b   :  { %358 = vmatmul.msk.f32.gmra.mxu2 %vm48_vm0, %v30_v14  ;;  %366 = vmatmul.msk.f32.gmra.mxu3 %vm48_vm0, %v38_v15 }
  0x22   :  { %343 = vmatmul.msk.f32.gmra.mxu0 %vm48_vm0, %v15_v16  ;;  %351 = vmatmul.msk.f32.gmra.mxu1 %vm48_vm0, %v23_v17 }
  0x23   :  { %359 = vmatmul.msk.f32.gmra.mxu2 %vm48_vm0, %v31_v18  ;;  %367 = vmatmul.msk.f32.gmra.mxu3 %vm48_vm0, %v39_v19 }
  0x2a   :  { %344 = vmatmul.msk.f32.gmra.mxu0 %vm48_vm0, %v16_v20  ;;  %352 = vmatmul.msk.f32.gmra.mxu1 %vm48_vm0, %v24_v21 }
  0x2b   :  { %360 = vmatmul.msk.f32.gmra.mxu2 %vm48_vm0, %v32_v22  ;;  %368 = vmatmul.msk.f32.gmra.mxu3 %vm48_vm0, %v40_v23 }
  0x32   :  { %345 = vmatmul.msk.f32.gmra.mxu0 %vm48_vm0, %v17_v24  ;;  %353 = vmatmul.msk.f32.gmra.mxu1 %vm48_vm0, %v25_v25 }
  0x33   :  { %361 = vmatmul.msk.f32.gmra.mxu2 %vm48_vm0, %v33_v26  ;;  %369 = vmatmul.msk.f32.gmra.mxu3 %vm48_vm0, %v41_v27 }
  0x3a   :  { %346 = vmatmul.msk.f32.gmra.mxu0 %vm48_vm0, %v18_v28  ;;  %354 = vmatmul.msk.f32.gmra.mxu1 %vm48_vm0, %v26_v29 }
  0x3b   :  { %362 = vmatmul.msk.f32.gmra.mxu2 %vm48_vm0, %v34_v30  ;;  %370 = vmatmul.msk.f32.gmra.mxu3 %vm48_vm0, %v42_v31 }
  0x42   :  { %347 = vmatmul.msk.f32.gmra.mxu0 %vm48_vm0, %v19_v32  ;;  %355 = vmatmul.msk.f32.gmra.mxu1 %vm48_vm0, %v27_v33 }
  0x43   :  { %363 = vmatmul.msk.f32.gmra.mxu2 %vm48_vm0, %v35_v34  ;;  %371 = vmatmul.msk.f32.gmra.mxu3 %vm48_vm0, %v43_v35 }
  0x87   :  { %v162_v36 = vpop.f32.mrf.mxu0  ;;  %v186_v37 = vpop.f32.mrf.mxu1 }
  0x8e   :  { %v210_v38 = vpop.f32.mrf.mxu2  ;;  %v234_v39 = vpop.f32.mrf.mxu3 }
  0x8f   :  { %v165_v40 = vpop.f32.mrf.mxu0  ;;  %v189_v41 = vpop.f32.mrf.mxu1 }
  0x90   :  { %v375_v42 = vpack.c.bf16 %v165_v40, %v162_v36  ;;  %v395_v43 = vpack.c.bf16 %v189_v41, %v186_v37 }
  0x92   :  { %376 = vst [vmem:[#allocation2] sm:$0xff] %v375_v42  }
  0x93   :  { %455 = vst [vmem:[#allocation2 + $0x20] sm:$0xff] %v395_v43  }
  0x96   :  { %v213_v44 = vpop.f32.mrf.mxu2  ;;  %v237_v45 = vpop.f32.mrf.mxu3 }
  0x97   :  { %v415_v46 = vpack.c.bf16 %v213_v44, %v210_v38  ;;  %v435_v47 = vpack.c.bf16 %v237_v45, %v234_v39  ;;  %v168_v48 = vpop.f32.mrf.mxu0  ;;  %v192_v49 = vpop.f32.mrf.mxu1 }
  0x99   :  { %459 = vst [vmem:[#allocation2 + $0x40] sm:$0xff] %v415_v46  }
  0x9a   :  { %463 = vst [vmem:[#allocation2 + $0x60] sm:$0xff] %v435_v47  }
  0x9e   :  { %v216_v50 = vpop.f32.mrf.mxu2  ;;  %v240_v51 = vpop.f32.mrf.mxu3 }
  0x9f   :  { %v171_v52 = vpop.f32.mrf.mxu0  ;;  %v195_v53 = vpop.f32.mrf.mxu1 }
  0xa0   :  { %v380_v54 = vpack.c.bf16 %v171_v52, %v168_v48  ;;  %v400_v55 = vpack.c.bf16 %v195_v53, %v192_v49 }
  0xa2   :  { %452 = vst [vmem:[#allocation2 + $0x8] sm:$0xff] %v380_v54  }
  0xa3   :  { %456 = vst [vmem:[#allocation2 + $0x28] sm:$0xff] %v400_v55  }
  0xa6   :  { %v219_v56 = vpop.f32.mrf.mxu2  ;;  %v243_v57 = vpop.f32.mrf.mxu3 }
  0xa7   :  { %v420_v58 = vpack.c.bf16 %v219_v56, %v216_v50  ;;  %v440_v59 = vpack.c.bf16 %v243_v57, %v240_v51  ;;  %v174_v60 = vpop.f32.mrf.mxu0  ;;  %v198_v61 = vpop.f32.mrf.mxu1 }
  0xa9   :  { %460 = vst [vmem:[#allocation2 + $0x48] sm:$0xff] %v420_v58  }
  0xaa   :  { %464 = vst [vmem:[#allocation2 + $0x68] sm:$0xff] %v440_v59  }
  0xae   :  { %v222_v62 = vpop.f32.mrf.mxu2  ;;  %v246_v63 = vpop.f32.mrf.mxu3 }
  0xaf   :  { %v177_v0 = vpop.f32.mrf.mxu0  ;;  %v201_v1 = vpop.f32.mrf.mxu1 }
  0xb0   :  { %v385_v2 = vpack.c.bf16 %v177_v0, %v174_v60  ;;  %v405_v3 = vpack.c.bf16 %v201_v1, %v198_v61 }
  0xb2   :  { %453 = vst [vmem:[#allocation2 + $0x10] sm:$0xff] %v385_v2  }
  0xb3   :  { %457 = vst [vmem:[#allocation2 + $0x30] sm:$0xff] %v405_v3  }
  0xb6   :  { %v225_v4 = vpop.f32.mrf.mxu2  ;;  %v249_v5 = vpop.f32.mrf.mxu3 }
  0xb7   :  { %v425_v6 = vpack.c.bf16 %v225_v4, %v222_v62  ;;  %v445_v7 = vpack.c.bf16 %v249_v5, %v246_v63  ;;  %v180_v8 = vpop.f32.mrf.mxu0  ;;  %v204_v9 = vpop.f32.mrf.mxu1 }
  0xb9   :  { %461 = vst [vmem:[#allocation2 + $0x50] sm:$0xff] %v425_v6  }
  0xba   :  { %465 = vst [vmem:[#allocation2 + $0x70] sm:$0xff] %v445_v7  }
  0xbe   :  { %v228_v10 = vpop.f32.mrf.mxu2  ;;  %v252_v11 = vpop.f32.mrf.mxu3 }
  0xbf   :  { %v183_v12 = vpop.f32.mrf.mxu0  ;;  %v207_v13 = vpop.f32.mrf.mxu1 }
  0xc0   :  { %v390_v14 = vpack.c.bf16 %v183_v12, %v180_v8  ;;  %v410_v15 = vpack.c.bf16 %v207_v13, %v204_v9 }
  0xc2   :  { %454 = vst [vmem:[#allocation2 + $0x18] sm:$0xff] %v390_v14  }
  0xc3   :  { %458 = vst [vmem:[#allocation2 + $0x38] sm:$0xff] %v410_v15  }
  0xc6   :  { %v231_v16 = vpop.f32.mrf.mxu2  ;;  %v255_v17 = vpop.f32.mrf.mxu3 }
  0xc7   :  { %v430_v18 = vpack.c.bf16 %v231_v16, %v228_v10  ;;  %v450_v19 = vpack.c.bf16 %v255_v17, %v252_v11 }
  0xc9   :  { %462 = vst [vmem:[#allocation2 + $0x58] sm:$0xff] %v430_v18  }
  0xca   :  { %466 = vst [vmem:[#allocation2 + $0x78] sm:$0xff] %v450_v19  }
  0xcb   :  { %334 = dma.vmem_to_hbm [thread:$0]  %s327_s1, 2048, %s329_s25, [#allocation3], %s509_s26, %s509_s26, %s510_s27  }
  0xcc   :  { %506 = dma.done.wait [#allocation3], 2048  }
  0xcd   :  { %507 = vsyncadd [#allocation3], 4294965248 }
  0xce   :  { %339 = vsyncpa [#allocation3], 1 }

</bundles_post_ra>
